<compile_context>
chip_gen: v7x
topology: tpu7x:2x2x1
jax: 0.10.0
libtpu: 0.0.40
codegen_flags: <defaults>
</compile_context>

<pallas_src>
import functools
import math

import jax
import jax.numpy as jnp
from jax.experimental import pallas as pl
from jax.experimental.pallas import tpu as pltpu


def _erf(z):
    # Abramowitz & Stegun 7.1.26 rational approximation of erf, |error| <= 1.5e-7.
    a1, a2, a3, a4, a5 = 0.254829592, -0.284496736, 1.421413741, -1.453152027, 1.061405429
    p = 0.3275911
    sign = jnp.where(z >= 0.0, 1.0, -1.0)
    az = jnp.abs(z)
    t = 1.0 / (1.0 + p * az)
    poly = ((((a5 * t + a4) * t + a3) * t + a2) * t + a1) * t
    return sign * (1.0 - poly * jnp.exp(-az * az))


def _gelu_exact(h):
    # PyTorch nn.GELU() default (exact, erf-based): 0.5 * h * (1 + erf(h / sqrt(2)))
    return 0.5 * h * (1.0 + _erf(h * (1.0 / math.sqrt(2.0))))


def _se_kernel(x_ref, w1t_ref, w2t_ref, o_ref, *, inv_hw):
    # x_ref  : (Bt, C, HW)  native dtype; spatial on lanes, channels on sublanes
    # w1t_ref: (C, hidden)  f32, fc[0].weight transposed
    # w2t_ref: (hidden, C)  f32, fc[2].weight transposed
    # o_ref  : (Bt, C, HW)  native dtype
    xf = x_ref[...].astype(jnp.float32)                     # upcast for the math only

    # --- squeeze: global average pool over spatial (cross-lane reduce on the XLU) ---
    pooled = jnp.sum(xf, axis=-1) * inv_hw                  # (Bt, C)

    # --- excitation: Linear -> GELU -> Linear -> Sigmoid (tiny MXU matmuls, batched over Bt) ---
    h = jnp.dot(pooled, w1t_ref[...], preferred_element_type=jnp.float32)   # (Bt, hidden)
    h = _gelu_exact(h)
    g = jnp.dot(h, w2t_ref[...], preferred_element_type=jnp.float32)        # (Bt, C)
    gate = jax.nn.sigmoid(g)[:, :, None]                    # (Bt, C, 1) per-(batch, channel) gate

    # --- scale: broadcast the gate along the spatial lanes and write back once ---
    o_ref[...] = (xf * gate).astype(o_ref.dtype)


def _choose_batch_tile(B, per_batch_bytes, target_bytes=2 << 20):
    """Pick Bt so each block is ~target_bytes, keeps grid >= 2 (v7x megacore), and divides B."""
    bt = max(1, min(B, target_bytes // max(per_batch_bytes, 1)))
    if B >= 2:
        bt = max(1, min(bt, B // 2))    # keep >= 2 grid steps so both v7x TensorCores get work
    while B % bt:                       # avoid a ragged trailing block
        bt -= 1
    return bt


def se_forward(x_nchw, w1, w2):
    """SE.forward: x * sigmoid(fc(avg_pool(x))); fc = Linear(C->hid) -> GELU -> Linear(hid->C), no biases.

    x_nchw : (B, C, H, W)   any float dtype; the output has the same dtype
    w1     : (hidden, C)    fc[0].weight
    w2     : (C, hidden)    fc[2].weight
    """
    B, C, H, W = x_nchw.shape
    hidden = w1.shape[0]
    HW = H * W
    dtype = x_nchw.dtype

    # NCHW flattened over spatial is contiguous -> free reshape; native dtype is kept (bf16 I/O
    # halves HBM traffic for this mem-bound op).
    x3 = x_nchw.reshape(B, C, HW)
    w1t = jnp.asarray(w1, jnp.float32).T                    # (C, hidden)
    w2t = jnp.asarray(w2, jnp.float32).T                    # (hidden, C)

    per_batch_bytes = C * HW * x3.dtype.itemsize
    bt = _choose_batch_tile(B, per_batch_bytes)
    grid = (B // bt,)

    # VMEM budget: in + out activation blocks, double-buffered, plus resident weights + slack.
    block_bytes = bt * per_batch_bytes
    w_bytes = (w1t.size + w2t.size) * 4
    vmem_bytes = int(min(max(4 * block_bytes + 2 * w_bytes + (2 << 20), 16 << 20), 48 << 20))

    kernel = functools.partial(_se_kernel, inv_hw=1.0 / float(HW))

    # NOTE: if HW is not a multiple of 128 (e.g. 7x7 / 14x14 maps), stores along the lane axis
    # become partially masked; a (B, HW, C)-with-C-on-lanes layout would then be preferable.
    out3 = pl.pallas_call(
        kernel,
        out_shape=jax.ShapeDtypeStruct((B, C, HW), dtype),
        grid=grid,
        in_specs=[
            pl.BlockSpec((bt, C, HW), lambda b: (b, 0, 0)),   # activation tile (double-buffered)
            pl.BlockSpec((C, hidden), lambda b: (0, 0)),      # weights resident across the grid
            pl.BlockSpec((hidden, C), lambda b: (0, 0)),
        ],
        out_specs=pl.BlockSpec((bt, C, HW), lambda b: (b, 0, 0)),
        input_output_aliases={0: 0},                          # gated in place: out reuses x's buffer
        compiler_params=pltpu.CompilerParams(
            dimension_semantics=("parallel",),                # pipeline + megacore shard (v7x)
            vmem_limit_bytes=vmem_bytes,
        ),
    )(x3, w1t, w2t)

    return out3.reshape(B, C, H, W)


def reference(x, w1, w2):
    """Pure-JAX reference matching PyTorch SE.forward (math in f32, output in x.dtype)."""
    xf = x.astype(jnp.float32)
    y = jnp.mean(xf, axis=(2, 3))                                         # (B, C)
    h = y @ jnp.asarray(w1, jnp.float32).T                                # (B, hidden)
    h = 0.5 * h * (1.0 + jax.scipy.special.erf(h / jnp.sqrt(2.0)))        # exact GELU
    g = jax.nn.sigmoid(h @ jnp.asarray(w2, jnp.float32).T)                # (B, C)
    return (xf * g[:, :, None, None]).astype(x.dtype)


if __name__ == "__main__":
    key = jax.random.PRNGKey(0)
    k_x, k_w1, k_w2 = jax.random.split(key, 3)

    # SE(inp=32, oup=32, expansion=0.25)  ->  hidden = int(32 * 0.25) = 8
    B, C, H, W = 2, 32, 16, 16
    hidden = int(C * 0.25)

    x = jax.random.normal(k_x, (B, C, H, W), jnp.float32)
    w1 = jax.random.normal(k_w1, (hidden, C), jnp.float32) * 0.1   # fc[0].weight (no bias)
    w2 = jax.random.normal(k_w2, (C, hidden), jnp.float32) * 0.1   # fc[2].weight (no bias)

    # f32 path
    ref = reference(x, w1, w2)                      # computed before the (aliased) kernel call
    out = jax.block_until_ready(se_forward(x, w1, w2))
    assert out.shape == (B, C, H, W) and out.dtype == x.dtype
    assert jnp.allclose(out, ref, atol=1e-4, rtol=1e-4), "f32 mismatch vs reference"

    # native-dtype (bf16) I/O path: output dtype follows input dtype, half the HBM traffic
    xb = x.astype(jnp.bfloat16)
    refb = reference(xb, w1, w2)
    outb = jax.block_until_ready(se_forward(xb, w1, w2))
    assert outb.dtype == jnp.bfloat16
    assert jnp.allclose(outb.astype(jnp.float32), refb.astype(jnp.float32),
                        atol=2e-2, rtol=2e-2), "bf16 mismatch vs reference"

    print("KERNEL_OK")
</pallas_src>

<mosaic_0001>
module attributes {stable_mosaic.version = 11 : i64} {
  func.func @_se_kernel(%arg0: i32, %arg1: memref<1x32x256xf32, #tpu.memory_space<vmem>>, %arg2: memref<32x8xf32, #tpu.memory_space<vmem>>, %arg3: memref<8x32xf32, #tpu.memory_space<vmem>>, %arg4: memref<1x32x256xf32, #tpu.memory_space<vmem>>) attributes {dimension_semantics = [#tpu.dimension_semantics<parallel>], iteration_bounds = array<i64: 2>, scalar_prefetch = 0 : i64, scratch_operands = 0 : i64, tpu.core_type = #tpu.core_type<tc>, window_params = [{transform_indices = @transform_0, window_bounds = array<i64: 1, 32, 256>}, {pipeline_mode = #tpu.pipeline_mode<synchronous>, transform_indices = @transform_1, window_bounds = array<i64: 32, 8>}, {pipeline_mode = #tpu.pipeline_mode<synchronous>, transform_indices = @transform_2, window_bounds = array<i64: 8, 32>}, {transform_indices = @transform_3, window_bounds = array<i64: 1, 32, 256>}]} {
    %c0 = arith.constant 0 : index
    %c0_0 = arith.constant 0 : index
    %c0_1 = arith.constant 0 : index
    %0 = vector.load %arg1[%c0, %c0_0, %c0_1] : memref<1x32x256xf32, #tpu.memory_space<vmem>>, vector<1x32x256xf32>
    %cst = arith.constant dense<0.000000e+00> : vector<1x32xf32>
    %1 = vector.multi_reduction <add>, %0, %cst [2] : vector<1x32x256xf32> to vector<1x32xf32>
    %cst_2 = arith.constant 3.906250e-03 : f32
    %2 = vector.broadcast %cst_2 : f32 to vector<1x32xf32>
    %3 = arith.mulf %1, %2 : vector<1x32xf32>
    %c0_3 = arith.constant 0 : index
    %c0_4 = arith.constant 0 : index
    %4 = vector.load %arg2[%c0_3, %c0_4] : memref<32x8xf32, #tpu.memory_space<vmem>>, vector<32x8xf32>
    %cst_5 = arith.constant dense<0.000000e+00> : vector<1x8xf32>
    %5 = tpu.matmul %3, %4, %cst_5 {dimension_numbers = #tpu.dot_dimension_numbers<[1], [0], [0], [1], [0, 0, 1, 1], [], []>} : vector<1x32xf32>, vector<32x8xf32>, vector<1x8xf32> -> vector<1x8xf32>
    %cst_6 = arith.constant 5.000000e-01 : f32
    %6 = vector.broadcast %cst_6 : f32 to vector<1x8xf32>
    %7 = arith.mulf %6, %5 : vector<1x8xf32>
    %cst_7 = arith.constant 0.707106769 : f32
    %8 = vector.broadcast %cst_7 : f32 to vector<1x8xf32>
    %9 = arith.mulf %5, %8 : vector<1x8xf32>
    %cst_8 = arith.constant 0.000000e+00 : f32
    %10 = vector.broadcast %cst_8 : f32 to vector<1x8xf32>
    %11 = arith.cmpf oge, %9, %10 : vector<1x8xf32>
    %cst_9 = arith.constant 1.000000e+00 : f32
    %cst_10 = arith.constant -1.000000e+00 : f32
    %12 = vector.broadcast %cst_9 : f32 to vector<1x8xf32>
    %13 = vector.broadcast %cst_10 : f32 to vector<1x8xf32>
    %14 = arith.select %11, %12, %13 : vector<1x8xi1>, vector<1x8xf32>
    %15 = math.absf %9 : vector<1x8xf32>
    %cst_11 = arith.constant 0.327591091 : f32
    %16 = vector.broadcast %cst_11 : f32 to vector<1x8xf32>
    %17 = arith.mulf %16, %15 : vector<1x8xf32>
    %cst_12 = arith.constant 1.000000e+00 : f32
    %18 = vector.broadcast %cst_12 : f32 to vector<1x8xf32>
    %19 = arith.addf %18, %17 : vector<1x8xf32>
    %cst_13 = arith.constant 1.000000e+00 : f32
    %20 = vector.broadcast %cst_13 : f32 to vector<1x8xf32>
    %21 = arith.divf %20, %19 : vector<1x8xf32>
    %cst_14 = arith.constant 1.06140542 : f32
    %22 = vector.broadcast %cst_14 : f32 to vector<1x8xf32>
    %23 = arith.mulf %22, %21 : vector<1x8xf32>
    %cst_15 = arith.constant -1.45315206 : f32
    %24 = vector.broadcast %cst_15 : f32 to vector<1x8xf32>
    %25 = arith.addf %23, %24 : vector<1x8xf32>
    %26 = arith.mulf %25, %21 : vector<1x8xf32>
    %cst_16 = arith.constant 1.42141378 : f32
    %27 = vector.broadcast %cst_16 : f32 to vector<1x8xf32>
    %28 = arith.addf %26, %27 : vector<1x8xf32>
    %29 = arith.mulf %28, %21 : vector<1x8xf32>
    %cst_17 = arith.constant -0.284496725 : f32
    %30 = vector.broadcast %cst_17 : f32 to vector<1x8xf32>
    %31 = arith.addf %29, %30 : vector<1x8xf32>
    %32 = arith.mulf %31, %21 : vector<1x8xf32>
    %cst_18 = arith.constant 0.254829586 : f32
    %33 = vector.broadcast %cst_18 : f32 to vector<1x8xf32>
    %34 = arith.addf %32, %33 : vector<1x8xf32>
    %35 = arith.mulf %34, %21 : vector<1x8xf32>
    %cst_19 = arith.constant 0.000000e+00 : f32
    %36 = vector.broadcast %cst_19 : f32 to vector<1x8xf32>
    %37 = arith.subf %36, %15 : vector<1x8xf32>
    %38 = arith.mulf %37, %15 : vector<1x8xf32>
    %39 = math.exp %38 : vector<1x8xf32>
    %40 = arith.mulf %35, %39 : vector<1x8xf32>
    %cst_20 = arith.constant 1.000000e+00 : f32
    %41 = vector.broadcast %cst_20 : f32 to vector<1x8xf32>
    %42 = arith.subf %41, %40 : vector<1x8xf32>
    %43 = arith.mulf %14, %42 : vector<1x8xf32>
    %cst_21 = arith.constant 1.000000e+00 : f32
    %44 = vector.broadcast %cst_21 : f32 to vector<1x8xf32>
    %45 = arith.addf %44, %43 : vector<1x8xf32>
    %46 = arith.mulf %7, %45 : vector<1x8xf32>
    %c0_22 = arith.constant 0 : index
    %c0_23 = arith.constant 0 : index
    %47 = vector.load %arg3[%c0_22, %c0_23] : memref<8x32xf32, #tpu.memory_space<vmem>>, vector<8x32xf32>
    %cst_24 = arith.constant dense<0.000000e+00> : vector<1x32xf32>
    %48 = tpu.matmul %46, %47, %cst_24 {dimension_numbers = #tpu.dot_dimension_numbers<[1], [0], [0], [1], [0, 0, 1, 1], [], []>} : vector<1x8xf32>, vector<8x32xf32>, vector<1x32xf32> -> vector<1x32xf32>
    %49 = arith.negf %48 : vector<1x32xf32>
    %50 = math.exp %49 : vector<1x32xf32>
    %cst_25 = arith.constant 1.000000e+00 : f32
    %51 = vector.broadcast %cst_25 : f32 to vector<1x32xf32>
    %52 = arith.addf %51, %50 : vector<1x32xf32>
    %53 = arith.divf %51, %52 : vector<1x32xf32>
    %54 = vector.shape_cast %53 : vector<1x32xf32> to vector<1x32x1xf32>
    %55 = vector.broadcast %54 : vector<1x32x1xf32> to vector<1x32x256xf32>
    %56 = arith.mulf %0, %55 : vector<1x32x256xf32>
    %c0_26 = arith.constant 0 : index
    %c0_27 = arith.constant 0 : index
    %c0_28 = arith.constant 0 : index
    %57 = vector.load %arg4[%c0_26, %c0_27, %c0_28] : memref<1x32x256xf32, #tpu.memory_space<vmem>>, vector<1x32x256xf32>
    tpu.vector_store %arg4[%c0_26, %c0_27, %c0_28], %56 {strides = array<i32>} : memref<1x32x256xf32, #tpu.memory_space<vmem>>, vector<1x32x256xf32>,
    return
  }
  func.func @transform_0(%arg0: i32) -> (i32, i32, i32) {
    %c0_i32 = arith.constant 0 : i32
    %c0_i32_0 = arith.constant 0 : i32
    %c0_i32_1 = arith.constant 0 : i32
    return %arg0, %c0_i32, %c0_i32_0 : i32, i32, i32
  }
  func.func @transform_1(%arg0: i32) -> (i32, i32) {
    %c0_i32 = arith.constant 0 : i32
    %c0_i32_0 = arith.constant 0 : i32
    %c0_i32_1 = arith.constant 0 : i32
    return %c0_i32, %c0_i32_0 : i32, i32
  }
  func.func @transform_2(%arg0: i32) -> (i32, i32) {
    %c0_i32 = arith.constant 0 : i32
    %c0_i32_0 = arith.constant 0 : i32
    %c0_i32_1 = arith.constant 0 : i32
    return %c0_i32, %c0_i32_0 : i32, i32
  }
  func.func @transform_3(%arg0: i32) -> (i32, i32, i32) {
    %c0_i32 = arith.constant 0 : i32
    %c0_i32_0 = arith.constant 0 : i32
    %c0_i32_1 = arith.constant 0 : i32
    return %arg0, %c0_i32, %c0_i32_0 : i32, i32, i32
  }
}

</mosaic_0001>

<bundles_post_ra>
// kernel: tpu_custom_call.1
= control target key start
LH: loop header
LB: loop body
LE: loop exit
PB: predicated region body
PF: predicated region fallthrough
CT: control target
= control target key end

     0   :  { %8 = vsyncpa [#allocation3], 0  ;;  %s1009_s0 = inlined_call_operand.hbm [shape: f32[2,32,256], index: 0, kind: input, shape index: {}, may-alias: {0,3}]   ;;  %s1010_s1 = inlined_call_operand.vmem [shape: f32[32,8], index: 1, kind: input, shape index: {}]   ;;  %s1011_s2 = inlined_call_operand.vmem [shape: f32[8,32], index: 2, kind: input, shape index: {}]   ;;  %s1012_s3 = inlined_call_operand.hbm [shape: f32[2,32,256], index: 3, kind: output, shape index: {}, may-alias: {0,3}]  }
   0x1   :  { %10 = vsyncpa [#allocation3 + $0x1], 0 }
   0x2   :  { %11 = vsyncpa [#allocation4], 0 }
   0x3   :  { %13 = vsyncpa [#allocation4 + $0x1], 0  ;;  %s789_s12 = smov 0   ;;  %s791_s13 = smov 0  }
   0x4   :  { %s793_s14 = smov 0   ;;  %s795_s15 = smov 0  }
   0x5 LB: > { %s810_s16 = sadd.s32 4294967295, %s757_s15   ;;  %s551_s17 = sadd.s32 4294967294, %s757_s15   ;;  %s757_s15 = sphi %s795_s15, %s1025_s15   ;;  %s753_s14 = sphi %s793_s14, %s1024_s14   ;;  %s749_s13 = sphi %s791_s13, %s1023_s13   ;;  %s745_s12 = sphi %s789_s12, %s1022_s12  }
   0x6   : > { %s814_s18 = sadd.s32 1, %s757_s15   ;;  %s26_s19 = sadd.s32 1, %s753_s14 }
   0x7   : > { %s23_s20 = ssub.s32 %s757_s15, %s814_s18  ;;  %p33_p0 = scmp.ne.s32.totalorder %s753_s14, %s749_s13 }
   0x8   : > { %p24_p1 = scmp.eq.s32.totalorder %s23_s20, 0  ;;  %p34_p2 = scmp.eq.s32.totalorder %s757_s15, 0 }
   0x9   : > { %p39_p3 = scmp.ne.s32.totalorder %s749_s13, %s745_s12  ;;  %p40_p4 = scmp.eq.s32.totalorder %s810_s16, 0 }
   0xa   : > { %s826_s21 = scalar_select %p24_p1, %s753_s14, %s26_s19  }
   0xb   : > { %p828_p5 = por %p34_p2, %p33_p0  ;;  %p832_p6 = por %p40_p4, %p39_p3 }
   0xc   : > { %p105_p7 = scmp.eq.s32.totalorder %s810_s16, 1  ;;  %p111_p8 = scmp.eq.s32.totalorder %s551_s17, 1 }
   0xd   : > { %p611_p10 = scmp.lt.s32.totalorder %s757_s15, 2  ;;  %s137_s26 = sand.u32 1, %s753_s14  }
   0xe   : > { %p839_p11 = por %p105_p7, %p33_p0  ;;  %p843_p12 = por %p111_p8, %p39_p3 }
   0xf   : > { %s568_s27 = sshll.u32 %s757_s15, 10  ;;  %s554_s28 = sshll.u32 %s137_s26, 6 }
  0x10   : > { %s1016_s24 = scalar_select %p839_p11, 1, 0 }
  0x11   : > { %s1017_s25 = scalar_select %p843_p12, 1, 0 }
  0x12   : > { %s852_s4 = scalar_lea.hbm %s1009_s0, %s568_s27  ;;  %s141_s5 = scalar_lea.vmem [#allocation2], %s554_s28 }
  0x13   : > { %s148_s6 = sshll.u32 %s141_s5, 4  ;;  %p856_p13 = pnand %p611_p10, %p828_p5  ;;  %s860_s6 = int_to_ptr.vmem [resolvable:$true] %s148_s6 }
  0x14   : > { %s862_s8 = scalar_lea.sflag [#allocation3], %s137_s26  ;;  %s661_s9 = scalar_lea.hbm %s852_s4, 1024 }
  0x15   : > { %p662_p0 = scmp.ne.s32.totalorder %s852_s4, %s661_s9  ;;  %p663_p1 = pneg %p856_p13 }
  0x16   : > { %s666_s17 = scalar_lea.hbm %s1009_s0, 2048  ;;  %p667_p4 = scmp.lt.u32.totalorder %s852_s4, %s1009_s0 }
  0x17   : > { %p664_p2 = pnand %p663_p1, %p662_p0  ;;  %p668_p5 = scmp.lt.u32.totalorder %s666_s17, %s661_s9 }
  0x18   : > { %p670_p8 = scmp.lt.u32.totalorder %s661_s9, %s852_s4 }
  0x19   : > { %p665_p3 = pneg %p664_p2  ;;  %p669_p7 = por %p668_p5, %p667_p4 }
  0x1b   : > { %p671_p10 = por %p670_p8, %p669_p7 }
  0x1d   : > { %p672_p9 = pnand %p671_p10, %p665_p3 }
  0x1f   : > { %675 = shalt.err (!%p672_p9)
}
  0x20   : > { %s676_s22 = scalar_lea.vmem %s860_s6, 1024  ;;  %s759_s26 = smov [#allocation2]  }
  0x21   : > { %p677_p0 = scmp.ne.s32.totalorder %s860_s6, %s676_s22  ;;  %s681_s27 = sshll.u32 %s759_s26, 4  ;;  %s682_s27 = int_to_ptr.vmem [resolvable:$false] %s681_s27 }
  0x22   : > { %s683_s28 = scalar_lea.vmem %s682_s27, 2048  ;;  %p684_p11 = scmp.lt.s32.totalorder %s860_s6, %s682_s27 }
  0x23   : > { %p679_p2 = pnand %p677_p0, %p663_p1  ;;  %p685_p4 = scmp.lt.s32.totalorder %s683_s28, %s676_s22 }
  0x25   : > { %p680_p12 = pneg %p679_p2  ;;  %p686_p5 = por %p685_p4, %p684_p11 }
  0x27   : > { %p687_p7 = pnand %p686_p5, %p680_p12 }
  0x29   : > { %690 = shalt.err (!%p687_p7)
}
  0x2a   : > { %s760_s29 = smov 256   ;;  %s761_s30 = smov 16  }
  0x2b   : > { %606 = dma.hbm_to_vmem [thread:$0]  (!%p856_p13), %s852_s4, 1024, %s860_s6, %s862_s8, %s760_s29, %s760_s29, %s761_s30  }
  0x2c   : > { %p557_p9 = scmp.ge.s32.totalorder %s757_s15, 1  ;;  %p156_p1 = scmp.lt.s32.totalorder %s757_s15, 3 }
  0x2e   : > { %p157_p3 = pnand %p557_p9, %p156_p1 }
  0x2f   : > { %s893_s5 = sand.u32 (!%p157_p3), 1, %s749_s13  }
  0x30   : > { %160 = sbr.rel (%p157_p3) target bundleno = 851 (0x353), region = 32  ;;  %s558_s9 = sshll.u32 (!%p157_p3), %s893_s5, 6 }
  0x31   : > { %s163_s10 = scalar_lea.sflag (!%p157_p3), [#allocation3], %s893_s5  ;;  %s166_s11 = scalar_lea.vmem (!%p157_p3), [#allocation2], %s558_s9 }
  0x37   : > { %736 = dma.done.wait (%p832_p6), %s163_s10, 1024  }
  0x38   : > { %738 = vsyncadd (%p832_p6), %s163_s10, 4294966272  ;;  %v903_v0 = vld [vmem:[%s166_s11] sm:$0xff]  ;;  %v905_v1 = vld [vmem:[%s166_s11 + $0x8] sm:$0xff]  ;;  %v762_v15 = vmov 0.0|0.0   ;;  %vm763_vm0 = vmmov 0   ;;  %v764_v19 = vmov 0.0   ;;  %v221_v20 = vlaneseq }
  0x39   : > { %v907_v2 = vld [vmem:[%s166_s11 + $0x20] sm:$0xff]  ;;  %v197_v3 = vadd.f32 %v905_v1, %v903_v0  ;;  %v911_v4 = vld [vmem:[%s166_s11 + $0x28] sm:$0xff]  ;;  %v913_v5 = vld [vmem:[%s166_s11 + $0x10] sm:$0xff]  ;;  %593 = vmatprep.subr.bf16.mxu0 %v762_v15  ;;  %585 = vmatprep.mubr.msk.f32.mxu0 %vm763_vm0, %v764_v19  ;;  %vm232_vm1 = vcmask 130112   ;;  %vm239_vm2 = vcmask 195712   ;;  %vm246_vm3 = vcmask 261312  }
  0x3a   : > { %v915_v6 = vld [vmem:[%s166_s11 + $0x18] sm:$0xff]  ;;  %v203_v7 = vadd.f32 %v911_v4, %v907_v2  ;;  %v919_v8 = vld [vmem:[%s166_s11 + $0x30] sm:$0xff]  ;;  %v213_v12 = vld [vmem:[%s1010_s1] sm:$0xff]  ;;  %588 = vmatprep.subr.mxu1 %v764_v19  ;;  %590 = vmatprep.mubr.msk.f32.mxu1 %vm763_vm0, %v764_v19  ;;  %v222_v21 = vand.u32 127, %v221_v20  ;;  %v939_v22 = vshrl.u32 %v221_v20, 7  ;;  %vm248_vm4 = vcmask 261120  }
  0x3b   : > { %v921_v9 = vld [vmem:[%s166_s11 + $0x38] sm:$0xff]  ;;  %198 = vadd.xlane.f32.xlu0 %v197_v3  ;;  %v200_v10 = vadd.f32 %v915_v6, %v913_v5  ;;  %v214_v13 = vld [vmem:[%s1010_s1 + $0x8] sm:$0xff]  ;;  %v215_v16 = vld [vmem:[%s1010_s1 + $0x10] sm:$0xff]  ;;  %vm349_vm6 = vcmask 64512   ;;  %s188_s27 = scalar_lea.vmem [#allocation5], %s558_s9  ;;  %s569_s29 = sshll.u32 %s810_s16, 10 }
  0x3c   : > { %204 = vadd.xlane.f32.xlu1 %v203_v7  ;;  %v206_v11 = vadd.f32 %v921_v9, %v919_v8  ;;  %v594_v14 = vpack.c.bf16 %v214_v13, %v213_v12  ;;  %v216_v17 = vld [vmem:[%s1010_s1 + $0x18] sm:$0xff]  ;;  %v227_v23 = vadd.s32 4294967288, %v222_v21  ;;  %v234_v25 = vadd.s32 4294967280, %v222_v21  ;;  %v348_v45 = vld [vmem:[%s1011_s2] sm:$0xff]  ;;  %s478_s28 = sshll.u32 %s188_s27, 4  ;;  %s963_s10 = scalar_lea.hbm %s1012_s3, %s569_s29  ;;  %s958_s28 = int_to_ptr.vmem [resolvable:$true] %s478_s28 }
  0x3d   : > { %v597_v18 = vpack.c.bf16 %v216_v17, %v215_v16  ;;  %v241_v26 = vadd.s32 4294967272, %v222_v21  ;;  %v225_v28 = vsub.s32 %v222_v21, %v939_v22  ;;  %589 = vmatpush3.msra.mxu1 %v348_v45  ;;  %v765_v12 = vmov -1.0   ;;  %s465_s16 = scalar_lea.sflag [#allocation4], %s893_s5  ;;  %s691_s11 = scalar_lea.vmem %s958_s28, 1024 }
  0x3e   : > { %595 = vmatpush3.bf16.msra.mxu0 %v594_v14  ;;  %v230_v30 = vsub.s32 %v227_v23, %v939_v22  ;;  %v237_v31 = vsub.s32 %v234_v25, %v939_v22  ;;  %p692_p6 = scmp.ne.s32.totalorder %s958_s28, %s691_s11  ;;  %p1019_p11 = scmp.ne.s32.totalorder %s1016_s24, 0 }
  0x3f   : > { %201 = vadd.xlane.f32.xlu0 %v200_v10  ;;  %596 = vmatprep.subr.bf16.mxu0 %v762_v15  ;;  %v244_v34 = vsub.s32 %v241_v26, %v939_v22  ;;  %s766_s23 = smov [#allocation5]  }
  0x40   : > { %207 = vadd.xlane.f32.xlu1 %v206_v11  ;;  %p693_p12 = pnand %p692_p6, %p1019_p11  ;;  %s695_s4 = sshll.u32 %s766_s23, 4  ;;  %s696_s4 = int_to_ptr.vmem [resolvable:$false] %s695_s4 }
  0x41   : > { %s697_s6 = scalar_lea.vmem %s696_s4, 2048  ;;  %p698_p8 = scmp.lt.s32.totalorder %s958_s28, %s696_s4 }
  0x42   : > { %598 = vmatpush3.bf16.msra.mxu0 %v597_v18  ;;  %p694_p13 = pneg %p693_p12  ;;  %p699_p10 = scmp.lt.s32.totalorder %s697_s6, %s691_s11 }
  0x44   : > { %p700_p0 = por %p699_p10, %p698_p8 }
  0x46   : > { %p701_p2 = pnand %p700_p0, %p694_p13 }
  0xc8   : > { %v199_v24 = vpop.xlane.xlu0 %198 }
  0xc9   : > { %v205_v27 = vpop.xlane.xlu1 %204  ;;  %v209_v29 = vmul.f32 0.00390625, %v199_v24  ;;  %v431_v24 = vsub.s32 0, %v939_v22 }
  0xca   : > { %v211_v32 = vmul.f32 0.00390625, %v205_v27 }
  0xcb   : > { %v226_v38 = vrot.slane %v209_v29, %v225_v28 }
  0xcc   : > { %v202_v33 = vpop.xlane.xlu0 %201  ;;  %v238_v40 = vrot.slane %v211_v32, %v237_v31 }
  0xcd   : > { %v210_v35 = vmul.f32 0.00390625, %v202_v33  ;;  %v208_v36 = vpop.xlane.xlu1 %207 }
  0xce   : > { %v212_v37 = vmul.f32 0.00390625, %v208_v36 }
  0xcf   : > { %v231_v39 = vrot.slane %v210_v35, %v230_v30 }
  0xd0   : > { %v245_v41 = vrot.slane %v212_v37, %v244_v34 }
  0xd1   : > { %v233_v42 = vsel %vm232_vm1, %v231_v39, %v226_v38 }
  0xd2   : > { %v240_v43 = vsel %vm239_vm2, %v238_v40, %v233_v42 }
  0xd3   : > { %v247_v44 = vsel %vm246_vm3, %v245_v41, %v240_v43 }
  0xd4   : > { %586 = vmatmul.mubr.msk.f32.vlgmr.msra.gmra.mrb[0].mxu0 %vm248_vm4, %v247_v44 }
 0x1a7   : > { %v317_v46 = vpop.f32.mrb[0].mxu0 }
 0x1a8   : > { %v322_v47 = vmul.f32 0.70710677, %v317_v46  ;;  %v587_v48 = vpop.f32.mrb[1].mxu0  ;;  %v321_v15 = vmul.f32 0.5, %v317_v46 }
 0x1aa   : > { %v325_v49 = vand.u32 2147483647, %v322_v47  ;;  %vm323_vm5 = vcmp.ge.f32.partialorder %v322_v47, 0.0 }
 0x1ab   : > { %v324_v13 = vsel %vm323_vm5, 1.0, %v765_v12 }
 0x1ac   : > { %v326_v50 = vmul.f32 0.3275911, %v325_v49  ;;  %v339_v52 = vsub.f32 0.0, %v325_v49 }
 0x1ae   : > { %v327_v51 = vadd.f32 1.0, %v326_v50  ;;  %v340_v54 = vmul.f32 %v339_v52, %v325_v49 }
 0x1b0   : > { %653 = vrcp.f32 %v327_v51  ;;  %v341_v57 = vmul.f32 1.442695, %v340_v54 }
 0x1b2   : > { %655 = vpow2.f32 %v341_v57 }
 0x1ba   : > { %v654_v53 = vpop.eup %653 }
 0x1bb   : > { %v330_v55 = vmul.f32 1.0614054, %v654_v53 }
 0x1bc   : > { %v656_v7 = vpop.eup %655 }
 0x1bd   : > { %v331_v56 = vadd.f32 -1.4531521, %v330_v55 }
 0x1bf   : > { %v332_v58 = vmul.f32 %v654_v53, %v331_v56 }
 0x1c1   : > { %v333_v59 = vadd.f32 1.4214138, %v332_v58 }
 0x1c3   : > { %v334_v60 = vmul.f32 %v654_v53, %v333_v59 }
 0x1c5   : > { %v335_v61 = vadd.f32 -0.28449672, %v334_v60 }
 0x1c7   : > { %v336_v62 = vmul.f32 %v654_v53, %v335_v61 }
 0x1c9   : > { %v337_v63 = vadd.f32 0.2548296, %v336_v62 }
 0x1cb   : > { %v338_v3 = vmul.f32 %v654_v53, %v337_v63 }
 0x1cd   : > { %v343_v10 = vmul.f32 %v656_v7, %v338_v3 }
 0x1cf   : > { %v344_v11 = vsub.f32 1.0, %v343_v10 }
 0x1d1   : > { %v345_v14 = vmul.f32 %v344_v11, %v324_v13 }
 0x1d3   : > { %v346_v16 = vadd.f32 1.0, %v345_v14 }
 0x1d5   : > { %v347_v17 = vmul.f32 %v346_v16, %v321_v15 }
 0x1d7   : > { %591 = vmatmul.mubr.msk.f32.vlgmr.msra.gmra.mrb[0].mxu1 %vm349_vm6, %v347_v17 }
 0x2aa   : > { %v419_v18 = vpop.f32.mrb[0].mxu1 }
 0x2ab   : > { %v562_v19 = vmul.f32 -1.442695, %v419_v18  ;;  %v592_v20 = vpop.f32.mrb[1].mxu1 }
 0x2ad   : > { %657 = vpow2.f32 %v562_v19 }
 0x2b7   : > { %v658_v21 = vpop.eup %657 }
 0x2b8   : > { %v426_v23 = vadd.f32 1.0, %v658_v21 }
 0x2ba   : > { %659 = vrcp.f32 %v426_v23 }
 0x2c4   : > { %v660_v25 = vpop.eup %659 }
 0x2c5   : > { %v432_v26 = vrot.slane %v660_v25, %v431_v24 }
 0x2c7   : > { %438 = vbcast.lane.b32.xlu1 %v432_v26, 264  ;;  %434 = vbcast.lane.b32.xlu0 %v432_v26, 256 }
 0x2cb   : > { %442 = vbcast.lane.b32.xlu1 %v432_v26, 272 }
 0x2cf   : > { %446 = vbcast.lane.b32.xlu1 %v432_v26, 280 }
 0x339   : > { %v439_v27 = vpop.permute.xlu1 %438  ;;  %v435_v28 = vpop.permute.xlu0 %434 }
 0x33a   : > { %v450_v29 = vmul.f32 %v439_v27, %v913_v5  ;;  %v451_v30 = vmul.f32 %v439_v27, %v915_v6  ;;  %v448_v31 = vmul.f32 %v435_v28, %v903_v0  ;;  %v449_v32 = vmul.f32 %v435_v28, %v905_v1 }
 0x33c   : > { %458 = vst [vmem:[%s188_s27 + $0x10] sm:$0xff] %v450_v29  ;;  %459 = vst [vmem:[%s188_s27 + $0x18] sm:$0xff] %v451_v30 }
 0x33d   : > { %456 = vst [vmem:[%s188_s27] sm:$0xff] %v448_v31  ;;  %457 = vst [vmem:[%s188_s27 + $0x8] sm:$0xff] %v449_v32  ;;  %v443_v22 = vpop.permute.xlu1 %442 }
 0x33e   : > { %v452_v33 = vmul.f32 %v443_v22, %v907_v2  ;;  %v453_v5 = vmul.f32 %v443_v22, %v911_v4 }
 0x340   : > { %460 = vst [vmem:[%s188_s27 + $0x20] sm:$0xff] %v452_v33  ;;  %461 = vst [vmem:[%s188_s27 + $0x28] sm:$0xff] %v453_v5 }
 0x341   : > { %v447_v0 = vpop.permute.xlu1 %446 }
 0x342   : > { %v454_v1 = vmul.f32 %v447_v0, %v919_v8  ;;  %v455_v2 = vmul.f32 %v447_v0, %v921_v9 }
 0x344   : > { %462 = vst [vmem:[%s188_s27 + $0x30] sm:$0xff] %v454_v1  ;;  %463 = vst [vmem:[%s188_s27 + $0x38] sm:$0xff] %v455_v2 }
 0x345   : > { %704 = shalt.err (!%p701_p2)
}
 0x346   : > { %s705_s7 = scalar_lea.hbm %s963_s10, 1024  ;;  %s709_s19 = scalar_lea.hbm %s1012_s3, 2048 }
 0x347   : > { %p706_p4 = scmp.ne.s32.totalorder %s963_s10, %s705_s7  ;;  %p710_p9 = scmp.lt.u32.totalorder %s963_s10, %s1012_s3 }
 0x348   : > { %p711_p1 = scmp.lt.u32.totalorder %s709_s19, %s705_s7  ;;  %p713_p6 = scmp.lt.u32.totalorder %s705_s7, %s963_s10 }
 0x349   : > { %p707_p5 = pnand %p706_p4, %p1019_p11 }
 0x34a   : > { %p712_p3 = por %p711_p1, %p710_p9 }
 0x34b   : > { %p708_p7 = pneg %p707_p5 }
 0x34c   : > { %p714_p12 = por %p713_p6, %p712_p3 }
 0x34e   : > { %p715_p13 = pnand %p714_p12, %p708_p7 }
 0x350   : > { %718 = shalt.err (!%p715_p13)
}
 0x351   : > { %s767_s26 = smov 256   ;;  %s768_s27 = smov 16  }
 0x352   : > { %601 = dma.vmem_to_hbm [thread:$0]  (%p1019_p11), %s958_s28, 1024, %s963_s10, %s465_s16, %s767_s26, %s767_s26, %s768_s27  }
 0x353 PF: > { %s493_s29 = sand.u32 1, %s745_s12   ;;  %p1020_p8 = scmp.ne.s32.totalorder %s1017_s25, 0 }
 0x354   : > { %p1021_p10 = scmp.ge.s32.totalorder %s757_s15, 2  ;;  %s494_s30 = scalar_lea.sflag [#allocation4], %s493_s29 }
 0x356   : > { %p608_p0 = pnand %p1021_p10, %p1020_p8 }
 0x358   : > { %740 = dma.done.wait (!%p608_p0), %s494_s30, 1024  }
 0x359   : > { %742 = vsyncadd (!%p608_p0), %s494_s30, 4294966272  ;;  %p16_p2 = scmp.ge.s32.totalorder %s814_s18, 4   ;;  %s1022_s12 = smov %s749_s13 }
 0x35a   : > { %s1023_s13 = smov %s753_s14  ;;  %s1024_s14 = smov %s826_s21 }
 0x35b   : > { %s1025_s15 = smov %s814_s18  ;;  %18 = sbr.rel (!%p16_p2) target bundleno = 5 (0x5), region = 77 }
 0x362   :  { %499 = vsyncpa [#allocation3], 1 }
 0x363   :  { %501 = vsyncpa [#allocation3 + $0x1], 1 }
 0x364   :  { %502 = vsyncpa [#allocation4], 1 }
 0x365   :  { %504 = vsyncpa [#allocation4 + $0x1], 1 }

</bundles_post_ra>
